<compile_context>
chip_gen: v6e
topology: v6e:2x2x1
jax: 0.10.0
libtpu: 0.0.40
codegen_flags: <defaults>
</compile_context>

<pallas_src>
import functools

import jax
import jax.numpy as jnp
from jax import lax
from jax.experimental import pallas as pl
from jax.experimental.pallas import tpu as pltpu


def _round_up(x, m):
    return ((x + m - 1) // m) * m


def _vmem_budget_bytes():
    """Per-generation scoped-VMEM budget with headroom for compiler scratch."""
    phys = None
    try:
        phys = getattr(pltpu.get_tpu_info(), "vmem_capacity_bytes", None)
    except Exception:
        phys = None
    if not phys:
        phys = 64 * 1024 * 1024  # conservative default: v7x per-core VMEM
    # ~75% of physical (=> ~48 MiB on v7x) and never more than ~100 MiB
    # (v5e / v6e have 128 MiB physical).
    return int(min(phys * 3 // 4, 100 * 1024 * 1024))


def _vmem_estimate(block_rows, b_pad, d, compute_bytes):
    """Corrected per-step VMEM footprint: double buffers + kernel temporaries."""
    zj_resident = 2 * b_pad * d * compute_bytes      # constant-index block, 2 pipeline bufs
    zi_tile = 2 * block_rows * d * 4                 # double-buffered f32 row tile
    out_tile = 2 * 8 * 128 * 4                       # partial-sum block
    temps = block_rows * d * (4 + compute_bytes)     # zi_n f32 + compute-dtype copy
    temps += 3 * block_rows * b_pad * 4              # sim, exp, mask temporaries
    return zj_resident + zi_tile + out_tile + temps


def _choose_block_rows(batch, d, budget, compute_bytes):
    """VMEM/MXU-aware row-tile chooser: multiples of 8, prefers 512/256."""
    for tm in (512, 256, 128, 64, 32, 16, 8):
        if tm > max(_round_up(batch, 8), 8):
            continue
        b_pad = _round_up(batch, tm)
        if _vmem_estimate(tm, b_pad, d, compute_bytes) <= (budget * 7) // 10:
            return tm, b_pad
    return 8, _round_up(batch, 8)


def _contrastive_loss_kernel(zi_ref, zjn_ref, out_ref, *, inv_temperature,
                             block_rows, valid_rows, valid_cols, compute_dtype):
    """One row tile of the (B, B) similarity matrix.

    zi_ref : (block_rows, D) raw z_i row tile (f32)
    zjn_ref: (B_pad, D) pre-normalized z_j in compute_dtype (resident across grid)
    out_ref: (1, 8, 128) lane-dense per-tile partial-sum block
    """
    zi = zi_ref[...].astype(jnp.float32)                       # (tm, D)

    eps = jnp.float32(1e-12)
    # F.normalize(x, dim=1) == x / max(||x||, eps): rsqrt on the clamped squared
    # norm sends the 1/sqrt to the EUP and avoids per-element divides.
    inv_i = lax.rsqrt(jnp.maximum(jnp.sum(zi * zi, axis=1, keepdims=True),
                                  eps * eps))
    # Fold 1/temperature into the z_i side only (picked up exactly once by both
    # the similarity rows and their diagonal).
    zi_n = zi * (inv_i * jnp.float32(inv_temperature))          # (tm, D), f32, /T folded
    zi_c = zi_n.astype(compute_dtype)

    zjn = zjn_ref[...]                                          # (B_pad, D), compute_dtype

    # MXU matmul contracting the shared feature (last) dim; f32 accumulate.
    sim = lax.dot_general(
        zi_c, zjn,
        dimension_numbers=(((1,), (1,)), ((), ())),
        preferred_element_type=jnp.float32,
    )                                                           # (tm, B_pad)

    b_pad = zjn_ref.shape[0]
    if valid_cols < b_pad:  # static: batch padded -> mask padded columns
        col_ids = lax.broadcasted_iota(jnp.int32, sim.shape, 1)
        sim = jnp.where(col_ids < valid_cols, sim, jnp.float32(-1e30))

    # Stable logsumexp over columns (f32 exp; bf16 exp is a v6e/v7x-only option
    # if profiling ever shows the EUP as the binding slot).
    row_max = jnp.max(sim, axis=1, keepdims=True)
    lse = jnp.log(jnp.sum(jnp.exp(sim - row_max), axis=1, keepdims=True)) + row_max

    # Diagonal of the global similarity matrix for these rows: row-wise dot with
    # the matching slice of the already-normalized resident z_j (no extra rsqrt,
    # no BxB iota/eye masks).
    row0 = pl.multiple_of(pl.program_id(0) * block_rows, block_rows)
    zjn_tile = zjn_ref[pl.ds(row0, block_rows), :].astype(jnp.float32)  # (tm, D)
    diag = jnp.sum(zi_n * zjn_tile, axis=1, keepdims=True)              # (tm, 1)

    per_row = lse - diag
    if valid_rows % block_rows != 0:  # static: last tile contains padded rows
        row_ids = row0 + lax.broadcasted_iota(jnp.int32, per_row.shape, 0)
        per_row = jnp.where(row_ids < valid_rows, per_row, jnp.float32(0.0))

    # Per-row-tile partial sum, broadcast over a full (8, 128) block so the
    # store is an unmasked lane-dense vst; reduced in the wrapper.
    partial = jnp.sum(per_row)
    out_ref[...] = jnp.full((1, 8, 128), partial, dtype=jnp.float32)


def contrastive_loss(z_i, z_j, temperature=0.5, compute_dtype=jnp.bfloat16):
    B, D = z_i.shape
    assert z_j.shape == (B, D)

    compute_bytes = jnp.dtype(compute_dtype).itemsize
    budget = _vmem_budget_bytes()
    block_rows, b_pad = _choose_block_rows(B, D, budget, compute_bytes)
    num_tiles = b_pad // block_rows

    # Normalize z_j exactly once in the wrapper and feed it to the kernel in the
    # MXU compute dtype as the resident operand (review item: stop re-normalizing
    # the full z_j on every grid step).
    eps = jnp.float32(1e-12)
    zj32 = z_j.astype(jnp.float32)
    inv_j = lax.rsqrt(jnp.maximum(jnp.sum(zj32 * zj32, axis=1, keepdims=True),
                                  eps * eps))
    zj_n = (zj32 * inv_j).astype(compute_dtype)

    zi_in = z_i.astype(jnp.float32)
    if b_pad != B:
        zi_in = jnp.pad(zi_in, ((0, b_pad - B), (0, 0)))
        zj_n = jnp.pad(zj_n, ((0, b_pad - B), (0, 0)))

    est_vmem = _vmem_estimate(block_rows, b_pad, D, compute_bytes)
    # Always set the scoped-VMEM limit from the corrected estimate (v5e's default
    # is only 16 MiB); capped with per-generation headroom by _vmem_budget_bytes.
    vmem_limit = int(min(budget, max(2 * est_vmem, 16 * 1024 * 1024)))

    kernel = functools.partial(
        _contrastive_loss_kernel,
        inv_temperature=1.0 / float(temperature),
        block_rows=block_rows,
        valid_rows=B,
        valid_cols=B,
        compute_dtype=compute_dtype,
    )

    partials = pl.pallas_call(
        kernel,
        out_shape=jax.ShapeDtypeStruct((num_tiles, 8, 128), jnp.float32),
        grid=(num_tiles,),
        in_specs=[
            pl.BlockSpec((block_rows, D), lambda i: (i, 0)),   # z_i row tile
            pl.BlockSpec((b_pad, D), lambda i: (0, 0)),        # normalized z_j, resident
        ],
        out_specs=pl.BlockSpec((1, 8, 128), lambda i: (i, 0, 0)),
        compiler_params=pltpu.CompilerParams(
            dimension_semantics=("parallel",),
            vmem_limit_bytes=vmem_limit,
        ),
    )(zi_in, zj_n)

    # Mean over the batch == F.cross_entropy(sim, arange(B)), reduction='mean'.
    return jnp.sum(partials[:, 0, 0]) / jnp.float32(B)


def _reference_loss(z_i, z_j, temperature=0.5):
    eps = 1e-12
    zi_n = z_i / jnp.maximum(jnp.linalg.norm(z_i, axis=1, keepdims=True), eps)
    zj_n = z_j / jnp.maximum(jnp.linalg.norm(z_j, axis=1, keepdims=True), eps)
    sim = zi_n @ zj_n.T / temperature
    lse = jax.nn.logsumexp(sim, axis=1)
    return jnp.mean(lse - jnp.diag(sim))


if __name__ == "__main__":
    key = jax.random.PRNGKey(0)
    k1, k2 = jax.random.split(key)
    B, D = 8, 32
    z_i = jax.random.normal(k1, (B, D), dtype=jnp.float32)
    z_j = jax.random.normal(k2, (B, D), dtype=jnp.float32)

    ref = _reference_loss(z_i, z_j, temperature=0.5)

    # f32 MXU path: tight check against the pure-JAX reference.
    loss_f32 = contrastive_loss(z_i, z_j, temperature=0.5,
                                compute_dtype=jnp.float32)
    jax.block_until_ready(loss_f32)
    assert jnp.allclose(loss_f32, ref, atol=1e-4, rtol=1e-4), (loss_f32, ref)

    # bf16 MXU path (default, fast): relaxed tolerance for bf16 input rounding.
    loss_bf16 = contrastive_loss(z_i, z_j, temperature=0.5)
    jax.block_until_ready(loss_bf16)
    assert jnp.allclose(loss_bf16, ref, atol=5e-2, rtol=5e-2), (loss_bf16, ref)

    print("KERNEL_OK")
</pallas_src>

<mosaic_0001>
module attributes {stable_mosaic.version = 11 : i64} {
  func.func @_contrastive_loss_kernel(%arg0: i32, %arg1: memref<8x32xf32, #tpu.memory_space<vmem>>, %arg2: memref<8x32xf32, #tpu.memory_space<vmem>>, %arg3: memref<1x8x128xf32, #tpu.memory_space<vmem>>) attributes {dimension_semantics = [#tpu.dimension_semantics<parallel>], iteration_bounds = array<i64: 1>, scalar_prefetch = 0 : i64, scratch_operands = 0 : i64, tpu.core_type = #tpu.core_type<tc>, window_params = [{transform_indices = @transform_0, window_bounds = array<i64: 8, 32>}, {pipeline_mode = #tpu.pipeline_mode<synchronous>, transform_indices = @transform_1, window_bounds = array<i64: 8, 32>}, {transform_indices = @transform_2, window_bounds = array<i64: 1, 8, 128>}]} {
    %c0 = arith.constant 0 : index
    %c0_0 = arith.constant 0 : index
    %0 = vector.load %arg1[%c0, %c0_0] : memref<8x32xf32, #tpu.memory_space<vmem>>, vector<8x32xf32>
    %1 = arith.mulf %0, %0 : vector<8x32xf32>
    %cst = arith.constant dense<0.000000e+00> : vector<8xf32>
    %2 = vector.multi_reduction <add>, %1, %cst [1] : vector<8x32xf32> to vector<8xf32>
    %3 = vector.shape_cast %2 : vector<8xf32> to vector<8x1xf32>
    %cst_1 = arith.constant 9.99999996E-13 : f32
    %cst_2 = arith.constant 9.99999996E-13 : f32
    %4 = arith.mulf %cst_1, %cst_2 : f32
    %5 = vector.broadcast %4 : f32 to vector<8x1xf32>
    %6 = arith.maximumf %3, %5 : vector<8x1xf32>
    %7 = math.rsqrt %6 : vector<8x1xf32>
    %cst_3 = arith.constant 2.000000e+00 : f32
    %8 = vector.broadcast %cst_3 : f32 to vector<8x1xf32>
    %9 = arith.mulf %7, %8 : vector<8x1xf32>
    %10 = vector.broadcast %9 : vector<8x1xf32> to vector<8x32xf32>
    %11 = arith.mulf %0, %10 : vector<8x32xf32>
    %c0_4 = arith.constant 0 : index
    %c0_5 = arith.constant 0 : index
    %12 = vector.load %arg2[%c0_4, %c0_5] : memref<8x32xf32, #tpu.memory_space<vmem>>, vector<8x32xf32>
    %cst_6 = arith.constant dense<0.000000e+00> : vector<8x8xf32>
    %13 = tpu.matmul %11, %12, %cst_6 {dimension_numbers = #tpu.dot_dimension_numbers<[1], [1], [0], [0], [0, 0, 1, 0], [], []>} : vector<8x32xf32>, vector<8x32xf32>, vector<8x8xf32> -> vector<8x8xf32>
    %cst_7 = arith.constant dense<0xFF800000> : vector<8xf32>
    %14 = vector.multi_reduction <maximumf>, %13, %cst_7 [1] : vector<8x8xf32> to vector<8xf32>
    %15 = vector.shape_cast %14 : vector<8xf32> to vector<8x1xf32>
    %16 = vector.broadcast %15 : vector<8x1xf32> to vector<8x8xf32>
    %17 = arith.subf %13, %16 : vector<8x8xf32>
    %18 = math.exp %17 : vector<8x8xf32>
    %cst_8 = arith.constant dense<0.000000e+00> : vector<8xf32>
    %19 = vector.multi_reduction <add>, %18, %cst_8 [1] : vector<8x8xf32> to vector<8xf32>
    %20 = vector.shape_cast %19 : vector<8xf32> to vector<8x1xf32>
    %21 = math.log %20 : vector<8x1xf32>
    %22 = arith.addf %21, %15 : vector<8x1xf32>
    %c8_i32 = arith.constant 8 : i32
    %23 = arith.muli %arg0, %c8_i32 : i32
    %24 = tpu.assume_multiple %23, 8 : i32
    %25 = arith.index_cast %24 : i32 to index
    %c0_9 = arith.constant 0 : index
    %26 = vector.load %arg2[%25, %c0_9] : memref<8x32xf32, #tpu.memory_space<vmem>>, vector<8x32xf32>
    %27 = arith.mulf %11, %26 : vector<8x32xf32>
    %cst_10 = arith.constant dense<0.000000e+00> : vector<8xf32>
    %28 = vector.multi_reduction <add>, %27, %cst_10 [1] : vector<8x32xf32> to vector<8xf32>
    %29 = vector.shape_cast %28 : vector<8xf32> to vector<8x1xf32>
    %30 = arith.subf %22, %29 : vector<8x1xf32>
    %31 = vector.shape_cast %30 : vector<8x1xf32> to vector<1x8x1xf32>
    %cst_11 = arith.constant dense<0.000000e+00> : vector<1xf32>
    %32 = vector.multi_reduction <add>, %31, %cst_11 [1, 2] : vector<1x8x1xf32> to vector<1xf32>
    %33 = vector.shape_cast %32 : vector<1xf32> to vector<1x1x1xf32>
    %34 = vector.extract %33[0, 0, 0] : f32 from vector<1x1x1xf32>
    %35 = vector.broadcast %34 : f32 to vector<1x8x128xf32>
    %c0_12 = arith.constant 0 : index
    %c0_13 = arith.constant 0 : index
    %c0_14 = arith.constant 0 : index
    %36 = vector.load %arg3[%c0_12, %c0_13, %c0_14] : memref<1x8x128xf32, #tpu.memory_space<vmem>>, vector<1x8x128xf32>
    tpu.vector_store %arg3[%c0_12, %c0_13, %c0_14], %35 {strides = array<i32>} : memref<1x8x128xf32, #tpu.memory_space<vmem>>, vector<1x8x128xf32>,
    return
  }
  func.func @transform_0(%arg0: i32) -> (i32, i32) {
    %c0_i32 = arith.constant 0 : i32
    %c0_i32_0 = arith.constant 0 : i32
    return %arg0, %c0_i32 : i32, i32
  }
  func.func @transform_1(%arg0: i32) -> (i32, i32) {
    %c0_i32 = arith.constant 0 : i32
    %c0_i32_0 = arith.constant 0 : i32
    %c0_i32_1 = arith.constant 0 : i32
    return %c0_i32, %c0_i32_0 : i32, i32
  }
  func.func @transform_2(%arg0: i32) -> (i32, i32, i32) {
    %c0_i32 = arith.constant 0 : i32
    %c0_i32_0 = arith.constant 0 : i32
    %c0_i32_1 = arith.constant 0 : i32
    return %arg0, %c0_i32, %c0_i32_0 : i32, i32, i32
  }
}

</mosaic_0001>

<bundles_post_ra>
// kernel: tpu_custom_call.1
= control target key start
LH: loop header
LB: loop body
LE: loop exit
PB: predicated region body
PF: predicated region fallthrough
CT: control target
= control target key end

     0   :  { %7 = vsyncpa [#allocation3], 0  ;;  %s294_s0 = inlined_call_operand.hbm [shape: f32[8,32], index: 0, kind: input, shape index: {}]   ;;  %s295_s1 = inlined_call_operand.hbm [shape: f32[8,32], index: 1, kind: input, shape index: {}]   ;;  %s296_s2 = inlined_call_operand.hbm [shape: f32[1,8,128], index: 2, kind: output, shape index: {}]  }
   0x1   :  { %8 = vsyncpa [#allocation6], 0 }
   0x2   :  { %9 = vsyncpa [#allocation4], 0  ;;  %s261_s9 = smov [#allocation2]   ;;  %s262_s11 = smov [#allocation5]  }
   0x3   :  { %s16_s10 = sshll.u32 %s261_s9, 4  ;;  %s26_s12 = sshll.u32 %s262_s11, 4  ;;  %s17_s10 = int_to_ptr.vmem [resolvable:$true] %s16_s10  ;;  %s27_s12 = int_to_ptr.vmem [resolvable:$true] %s26_s12 }
   0x4   :  { %s203_s13 = scalar_lea.vmem %s17_s10, 128  ;;  %p208_p1 = scmp.lt.s32.totalorder %s17_s10, %s17_s10 }
   0x5   :  { %p204_p0 = scmp.ne.s32.totalorder %s17_s10, %s203_s13  ;;  %p209_p2 = scmp.lt.s32.totalorder %s203_s13, %s203_s13 }
   0x7   :  { %p210_p3 = por %p209_p2, %p208_p1 }
   0x9   :  { %p211_p4 = pnand %p210_p3, %p204_p0 }
   0xb   :  { %214 = shalt.err (!%p211_p4)
}
   0xc   :  { %19 = dma.hbm_to_vmem [thread:$0]  %s294_s0, 128, %s17_s10, [#allocation3]  }
   0xd   :  { %s223_s16 = scalar_lea.vmem %s27_s12, 128  ;;  %p228_p6 = scmp.lt.s32.totalorder %s27_s12, %s27_s12 }
   0xe   :  { %p224_p5 = scmp.ne.s32.totalorder %s27_s12, %s223_s16  ;;  %p229_p7 = scmp.lt.s32.totalorder %s223_s16, %s223_s16 }
  0x10   :  { %p230_p8 = por %p229_p7, %p228_p6 }
  0x12   :  { %p231_p9 = pnand %p230_p8, %p224_p5 }
  0x14   :  { %234 = shalt.err (!%p231_p9)
}
  0x15   :  { %29 = dma.hbm_to_vmem [thread:$0]  %s295_s1, 128, %s27_s12, [#allocation6]  }
  0x16   :  { %255 = dma.done.wait [#allocation3], 128  }
  0x17   :  { %256 = vsyncadd [#allocation3], 4294967168 }
  0x18   :  { %257 = dma.done.wait [#allocation6], 128  }
  0x19   :  { %258 = vsyncadd [#allocation6], 4294967168  ;;  %v36_v0 = vld [vmem:[#allocation2] sm:$0xff]  ;;  %vm38_vm0 = vcmask 261120   ;;  %v263_v3 = vmov 0.0   ;;  %v46_v4 = vld [vmem:[#allocation5] sm:$0xff] }
  0x1a   :  { %v37_v1 = vmul.f32 %v36_v0, %v36_v0  ;;  %177 = vmatprep.subr.mxu0 %v263_v3  ;;  %vm264_vm1 = vmmov 0   ;;  %vm123_vm2 = vcmask 64512   ;;  %vm144_vm3 = vcmask 7168   ;;  %s265_s0 = smov [#allocation7]  }
  0x1b   :  { %178 = vmatpush3.xpose.msk.msra.mxu0 %vm38_vm0, %v46_v4  ;;  %179 = vmatprep.mubr.msk.f32.mxu0 %vm264_vm1, %v263_v3  ;;  %s163_s1 = sshll.u32 %s265_s0, 4  ;;  %s164_s1 = int_to_ptr.vmem [resolvable:$true] %s163_s1 }
  0x1c   :  { %v39_v2 = vsel %vm38_vm0, %v37_v1, 0.0  ;;  %s235_s20 = scalar_lea.vmem %s164_s1, 128  ;;  %p240_p11 = scmp.lt.s32.totalorder %s164_s1, %s164_s1 }
  0x1d   :  { %40 = vadd.xlane.f32.xlu0 %v39_v2  ;;  %p236_p10 = scmp.ne.s32.totalorder %s164_s1, %s235_s20  ;;  %p241_p12 = scmp.lt.s32.totalorder %s235_s20, %s235_s20 }
  0x1f   :  { %p242_p13 = por %p241_p12, %p240_p11 }
  0x21   :  { %p243_p0 = pnand %p242_p13, %p236_p10 }
  0xa6   :  { %v41_v5 = vpop.xlane.xlu0 %40 }
  0xa7   :  { %v42_v6 = vmax.f32 %v41_v5, 1e-24 }
  0xa9   :  { %189 = vrsqrt.f32 %v42_v6 }
  0xb6   :  { %v190_v7 = vpop.eup %189 }
  0xb7   :  { %v44_v8 = vmul.f32 2.0, %v190_v7 }
  0xb9   :  { %v45_v9 = vmul.f32 %v44_v8, %v36_v0 }
  0xbb   :  { %180 = vmatmul.mubr.msk.f32.vlgmr.msra.gmra.mxu0 %vm38_vm0, %v45_v9  ;;  %v139_v18 = vmul.f32 %v46_v4, %v45_v9 }
  0xbd   :  { %v140_v19 = vsel %vm38_vm0, %v139_v18, 0.0 }
 0x17b   :  { %v119_v10 = vpop.f32.mrf.mxu0 }
 0x17c   :  { %v124_v11 = vsel %vm123_vm2, %v119_v10, -inf }
 0x17d   :  { %125 = vmax.xlane.f32.xlu0 %v124_v11  ;;  %v181_v12 = vpop.f32.mrf.mxu0 }
 0x206   :  { %v126_v13 = vpop.xlane.xlu0 %125 }
 0x207   :  { %v127_v14 = vsub.f32 %v119_v10, %v126_v13 }
 0x209   :  { %v128_v15 = vmul.f32 1.442695, %v127_v14 }
 0x20b   :  { %191 = vpow2.f32 %v128_v15 }
 0x218   :  { %v192_v16 = vpop.eup %191 }
 0x219   :  { %v130_v17 = vsel %vm123_vm2, %v192_v16, 0.0 }
 0x21a   :  { %131 = vadd.xlane.f32.xlu1 %v130_v17 }
 0x21e   :  { %141 = vadd.xlane.f32.xlu1 %v140_v19 }
 0x2a3   :  { %v132_v20 = vpop.xlane.xlu1 %131 }
 0x2a4   :  { %193 = vlog2.f32 %v132_v20 }
 0x2a7   :  { %v142_v24 = vpop.xlane.xlu1 %141 }
 0x2b1   :  { %v194_v21 = vpop.eup %193 }
 0x2b2   :  { %v134_v22 = vmul.f32 0.6931472, %v194_v21 }
 0x2b4   :  { %v135_v23 = vadd.f32 %v134_v22, %v126_v13 }
 0x2b6   :  { %v143_v25 = vsub.f32 %v135_v23, %v142_v24 }
 0x2b8   :  { %v145_v26 = vsel %vm144_vm3, %v143_v25, 0.0 }
 0x2b9   :  { %146 = vadd.xlane.f32.xlu0 %v145_v26 }
 0x342   :  { %v147_v27 = vpop.xlane.xlu0 %146 }
 0x343   :  { %v148_v28 = vrot.slane %v147_v27, 4 }
 0x345   :  { %v149_v29 = vadd.f32 %v148_v28, %v147_v27 }
 0x347   :  { %v150_v30 = vrot.slane %v149_v29, 2 }
 0x349   :  { %v151_v31 = vadd.f32 %v150_v30, %v149_v29 }
 0x34b   :  { %v152_v32 = vrot.slane %v151_v31, 1 }
 0x34d   :  { %v153_v33 = vadd.f32 %v152_v32, %v151_v31 }
 0x34f   :  { %182 = vpush %v153_v33 }
 0x380   :  { %s183_s19 = spop %182 }
 0x381   :  { %v155_v34 = vstv %s183_s19 }
 0x382   :  { %156 = vst [vmem:[#allocation7] sm:$0xff] %v155_v34 }
 0x383   :  { %246 = shalt.err (!%p243_p0)
}
 0x384   :  { %166 = dma.vmem_to_hbm [thread:$0]  %s164_s1, 128, %s296_s2, [#allocation4]  }
 0x385   :  { %259 = dma.done.wait [#allocation4], 128  }
 0x386   :  { %260 = vsyncadd [#allocation4], 4294967168 }
 0x387   :  { %170 = vsyncpa [#allocation3], 1 }
 0x388   :  { %171 = vsyncpa [#allocation6], 1 }
 0x389   :  { %172 = vsyncpa [#allocation4], 1 }

</bundles_post_ra>
